<compile_context>
chip_gen: v5e
topology: v5e:2x2
jax: 0.10.0
libtpu: 0.0.40
codegen_flags: <defaults>
</compile_context>

<pallas_src>
import functools

import numpy as np
import jax
import jax.numpy as jnp
from jax.experimental import pallas as pl
from jax.experimental.pallas import tpu as pltpu


def _transition_kernel(x_ref, scale_ref, shift_ref, w_ref, b_ref, o_ref, *, mm_dtype):
    """One (batch, H-row-tile) block.

    x_ref:     (1, TH, Wo, 2C)   input with each W-pair merged into the channel axis
    scale_ref: (1, 1, 2C)        folded BN scale (duplicated over the W-pair)
    shift_ref: (1, 1, 2C)        folded BN shift (duplicated over the W-pair)
    w_ref:     (2C, Cout)        1x1 conv weight, duplicated over the W-pair and
                                 pre-scaled by the 0.25 AvgPool factor
    b_ref:     (1, Cout)         conv bias (added once, after pooling)
    o_ref:     (1, THo, Wo, Cout)
    """
    _, THo, Wo, Cout = o_ref.shape
    _, _, _, C2 = x_ref.shape

    # BatchNorm (folded scale/shift) + ReLU, f32 on the VPU (lane-dense over 2C).
    x = x_ref[0].astype(jnp.float32)                              # (TH, Wo, 2C)
    z = jnp.maximum(x * scale_ref[...] + shift_ref[...], 0.0)

    # AvgPool2d(2,2), H-direction: sum adjacent row pairs (leading-dim ops only).
    z = z.reshape(THo, 2, Wo, C2)
    zh = z[:, 0] + z[:, 1]                                        # (THo, Wo, 2C)

    # 1x1 conv fused with the AvgPool W-direction: weights are duplicated along the
    # merged W-pair axis and carry the 0.25 factor.  f32 accumulation on the MXU.
    zh2 = zh.reshape(THo * Wo, C2).astype(mm_dtype)
    y = jnp.dot(zh2, w_ref[...], preferred_element_type=jnp.float32)   # (THo*Wo, Cout)
    y = y + b_ref[...]                                            # bias after pooling

    o_ref[0] = y.reshape(THo, Wo, Cout).astype(o_ref.dtype)


def _pick_row_tile(H, row_bytes, budget_bytes=2 << 20):
    """Largest even divisor of H whose input tile fits the VMEM budget
    (Pallas double-buffers each input block)."""
    best = 2
    for th in range(2, H + 1, 2):
        if H % th == 0 and th * row_bytes <= budget_bytes:
            best = th
    return best


def transition_layer(x_nchw, gamma, beta, conv_w, conv_b, eps=1e-5, matmul_dtype=None):
    """Pallas implementation of Transition_layer.forward (NCHW in / NCHW out).

    matmul_dtype: dtype of the MXU operands for the fused conv+pool matmul
      (e.g. jnp.bfloat16 on v5e/v6e/v7x).  BN/ReLU always runs in f32.
    """
    N, C, H, W = x_nchw.shape
    assert H % 2 == 0 and W % 2 == 0, "AvgPool2d(2,2) requires even H and W"
    Cout = conv_w.shape[0]
    Ho, Wo = H // 2, W // 2
    mm_dtype = jnp.dtype(x_nchw.dtype) if matmul_dtype is None else jnp.dtype(matmul_dtype)

    # --- glue: NCHW -> NHWC, then merge each W-pair into channels (free reshape) ---
    xt = jnp.transpose(x_nchw, (0, 2, 3, 1))                      # (N, H, W, C)
    xm = xt.reshape(N, H, Wo, 2 * C)                              # (N, H, Wo, 2C)

    # --- glue: BatchNorm2d training-mode batch stats in ONE pass (E[x], E[x^2]) ---
    # TODO(synk): for very large inputs these stats could move into a 2-pass Pallas grid.
    xf = xt.reshape(-1, C).astype(jnp.float32)
    mean = jnp.mean(xf, axis=0)
    mean_sq = jnp.mean(xf * xf, axis=0)
    var = mean_sq - mean * mean                                   # biased var (PyTorch fwd)
    scale = gamma.astype(jnp.float32) * jax.lax.rsqrt(var + eps)
    shift = beta.astype(jnp.float32) - mean * scale
    scale2 = jnp.tile(scale, 2).reshape(1, 1, 2 * C)              # duplicated for W-pair
    shift2 = jnp.tile(shift, 2).reshape(1, 1, 2 * C)

    # --- glue: 1x1 conv weight, duplicated over the W-pair, pre-scaled by 0.25 ---
    w2 = conv_w.reshape(Cout, C).T.astype(jnp.float32)            # (C, Cout)
    wcat = (0.25 * jnp.concatenate([w2, w2], axis=0)).astype(mm_dtype)   # (2C, Cout)
    bias = conv_b.reshape(1, Cout).astype(jnp.float32)

    # Row tiling: largest even divisor of H whose x tile fits a small VMEM budget.
    row_bytes = Wo * 2 * C * jnp.dtype(x_nchw.dtype).itemsize
    TH = _pick_row_tile(H, row_bytes)
    THo = TH // 2
    grid = (N, H // TH)

    kernel = functools.partial(_transition_kernel, mm_dtype=mm_dtype)
    out_nhwc = pl.pallas_call(
        kernel,
        out_shape=jax.ShapeDtypeStruct((N, Ho, Wo, Cout), x_nchw.dtype),
        grid=grid,
        in_specs=[
            pl.BlockSpec((1, TH, Wo, 2 * C), lambda n, t: (n, t, 0, 0)),
            pl.BlockSpec((1, 1, 2 * C), lambda n, t: (0, 0, 0)),
            pl.BlockSpec((1, 1, 2 * C), lambda n, t: (0, 0, 0)),
            pl.BlockSpec((2 * C, Cout), lambda n, t: (0, 0)),
            pl.BlockSpec((1, Cout), lambda n, t: (0, 0)),
        ],
        out_specs=pl.BlockSpec((1, THo, Wo, Cout), lambda n, t: (n, t, 0, 0)),
        compiler_params=pltpu.CompilerParams(
            dimension_semantics=("parallel", "parallel")),
    )(xm, scale2, shift2, wcat, bias)

    # --- glue: back to NCHW (output is 8x smaller than the input; cheap pass) ---
    return jnp.transpose(out_nhwc, (0, 3, 1, 2))


def transition_layer_reference(x_nchw, gamma, beta, conv_w, conv_b, eps=1e-5):
    """Plain-JAX reference matching PyTorch semantics (for correctness check)."""
    mean = jnp.mean(x_nchw, axis=(0, 2, 3), keepdims=True)
    var = jnp.var(x_nchw, axis=(0, 2, 3), keepdims=True)
    xn = (x_nchw - mean) / jnp.sqrt(var + eps)
    xn = xn * gamma.reshape(1, -1, 1, 1) + beta.reshape(1, -1, 1, 1)
    z = jnp.maximum(xn, 0.0)
    Cout, C = conv_w.shape[0], conv_w.shape[1]
    y = jnp.einsum('nchw,oc->nohw', z, conv_w.reshape(Cout, C))
    y = y + conv_b.reshape(1, -1, 1, 1)
    N, Co, H, W = y.shape
    return y.reshape(N, Co, H // 2, 2, W // 2, 2).mean(axis=(3, 5))


if __name__ == "__main__":
    # Module config: input_feature=4, reduction=0.5 -> out channels = 2
    input_feature = 4
    reduction = 0.5
    Cout = int(input_feature * reduction)
    N, H, W = 2, 16, 16

    key = jax.random.PRNGKey(0)
    kx, kg, kb, kw, kbb = jax.random.split(key, 5)
    x = jax.random.normal(kx, (N, input_feature, H, W), dtype=jnp.float32)
    gamma = jax.random.normal(kg, (input_feature,), dtype=jnp.float32) * 0.1 + 1.0
    beta = jax.random.normal(kb, (input_feature,), dtype=jnp.float32) * 0.1
    conv_w = jax.random.normal(kw, (Cout, input_feature, 1, 1), dtype=jnp.float32) * 0.1
    conv_b = jax.random.normal(kbb, (Cout,), dtype=jnp.float32) * 0.1

    ref = transition_layer_reference(x, gamma, beta, conv_w, conv_b)

    # f32 MXU operands: tight tolerance.
    out = transition_layer(x, gamma, beta, conv_w, conv_b)
    out = jax.block_until_ready(out)
    assert out.shape == (N, Cout, H // 2, W // 2), out.shape
    np.testing.assert_allclose(np.asarray(out), np.asarray(ref), rtol=1e-5, atol=1e-5)

    # bf16 MXU operands (v5e/v6e/v7x fast path), f32 accumulation: looser tolerance.
    out_bf16 = transition_layer(x, gamma, beta, conv_w, conv_b,
                                matmul_dtype=jnp.bfloat16)
    out_bf16 = jax.block_until_ready(out_bf16)
    np.testing.assert_allclose(np.asarray(out_bf16), np.asarray(ref), rtol=2e-2, atol=2e-2)

    print("KERNEL_OK")
</pallas_src>

<mosaic_0001>
module attributes {stable_mosaic.version = 11 : i64} {
  func.func @_transition_kernel(%arg0: i32, %arg1: i32, %arg2: memref<1x16x8x8xf32, #tpu.memory_space<vmem>>, %arg3: memref<1x1x8xf32, #tpu.memory_space<vmem>>, %arg4: memref<1x1x8xf32, #tpu.memory_space<vmem>>, %arg5: memref<8x2xf32, #tpu.memory_space<vmem>>, %arg6: memref<1x2xf32, #tpu.memory_space<vmem>>, %arg7: memref<1x8x8x2xf32, #tpu.memory_space<vmem>>) attributes {dimension_semantics = [#tpu.dimension_semantics<parallel>, #tpu.dimension_semantics<parallel>], iteration_bounds = array<i64: 2, 1>, scalar_prefetch = 0 : i64, scratch_operands = 0 : i64, tpu.core_type = #tpu.core_type<tc>, window_params = [{transform_indices = @transform_0, window_bounds = array<i64: 1, 16, 8, 8>}, {pipeline_mode = #tpu.pipeline_mode<synchronous>, transform_indices = @transform_1, window_bounds = array<i64: 1, 1, 8>}, {pipeline_mode = #tpu.pipeline_mode<synchronous>, transform_indices = @transform_2, window_bounds = array<i64: 1, 1, 8>}, {pipeline_mode = #tpu.pipeline_mode<synchronous>, transform_indices = @transform_3, window_bounds = array<i64: 8, 2>}, {pipeline_mode = #tpu.pipeline_mode<synchronous>, transform_indices = @transform_4, window_bounds = array<i64: 1, 2>}, {transform_indices = @transform_5, window_bounds = array<i64: 1, 8, 8, 2>}]} {
    %c0 = arith.constant 0 : index
    %c0_0 = arith.constant 0 : index
    %c0_1 = arith.constant 0 : index
    %c0_2 = arith.constant 0 : index
    %0 = vector.load %arg2[%c0, %c0_0, %c0_1, %c0_2] : memref<1x16x8x8xf32, #tpu.memory_space<vmem>>, vector<1x16x8x8xf32>
    %1 = vector.shape_cast %0 : vector<1x16x8x8xf32> to vector<16x8x8xf32>
    %c0_3 = arith.constant 0 : index
    %c0_4 = arith.constant 0 : index
    %c0_5 = arith.constant 0 : index
    %2 = vector.load %arg3[%c0_3, %c0_4, %c0_5] : memref<1x1x8xf32, #tpu.memory_space<vmem>>, vector<1x1x8xf32>
    %3 = vector.broadcast %2 : vector<1x1x8xf32> to vector<16x8x8xf32>
    %4 = arith.mulf %1, %3 : vector<16x8x8xf32>
    %c0_6 = arith.constant 0 : index
    %c0_7 = arith.constant 0 : index
    %c0_8 = arith.constant 0 : index
    %5 = vector.load %arg4[%c0_6, %c0_7, %c0_8] : memref<1x1x8xf32, #tpu.memory_space<vmem>>, vector<1x1x8xf32>
    %6 = vector.broadcast %5 : vector<1x1x8xf32> to vector<16x8x8xf32>
    %7 = arith.addf %4, %6 : vector<16x8x8xf32>
    %cst = arith.constant 0.000000e+00 : f32
    %8 = vector.broadcast %cst : f32 to vector<16x8x8xf32>
    %9 = arith.maximumf %7, %8 : vector<16x8x8xf32>
    %10 = vector.shape_cast %9 : vector<16x8x8xf32> to vector<8x2x8x8xf32>
    %11 = vector.extract_strided_slice %10 {offsets = [0, 0, 0, 0], sizes = [8, 1, 8, 8], strides = [1, 1, 1, 1]} : vector<8x2x8x8xf32> to vector<8x1x8x8xf32>
    %12 = vector.shape_cast %11 : vector<8x1x8x8xf32> to vector<8x8x8xf32>
    %13 = vector.extract_strided_slice %10 {offsets = [0, 1, 0, 0], sizes = [8, 1, 8, 8], strides = [1, 1, 1, 1]} : vector<8x2x8x8xf32> to vector<8x1x8x8xf32>
    %14 = vector.shape_cast %13 : vector<8x1x8x8xf32> to vector<8x8x8xf32>
    %15 = arith.addf %12, %14 : vector<8x8x8xf32>
    %16 = vector.shape_cast %15 : vector<8x8x8xf32> to vector<64x8xf32>
    %c0_9 = arith.constant 0 : index
    %c0_10 = arith.constant 0 : index
    %17 = vector.load %arg5[%c0_9, %c0_10] : memref<8x2xf32, #tpu.memory_space<vmem>>, vector<8x2xf32>
    %cst_11 = arith.constant dense<0.000000e+00> : vector<64x2xf32>
    %18 = tpu.matmul %16, %17, %cst_11 {dimension_numbers = #tpu.dot_dimension_numbers<[1], [0], [0], [1], [0, 0, 1, 1], [], []>} : vector<64x8xf32>, vector<8x2xf32>, vector<64x2xf32> -> vector<64x2xf32>
    %c0_12 = arith.constant 0 : index
    %c0_13 = arith.constant 0 : index
    %19 = vector.load %arg6[%c0_12, %c0_13] : memref<1x2xf32, #tpu.memory_space<vmem>>, vector<1x2xf32>
    %20 = vector.broadcast %19 : vector<1x2xf32> to vector<64x2xf32>
    %21 = arith.addf %18, %20 : vector<64x2xf32>
    %22 = vector.shape_cast %21 : vector<64x2xf32> to vector<8x8x2xf32>
    %c0_14 = arith.constant 0 : index
    %c0_15 = arith.constant 0 : index
    %c0_16 = arith.constant 0 : index
    %c0_17 = arith.constant 0 : index
    %23 = vector.load %arg7[%c0_14, %c0_15, %c0_16, %c0_17] : memref<1x8x8x2xf32, #tpu.memory_space<vmem>>, vector<1x8x8x2xf32>
    %24 = vector.shape_cast %23 : vector<1x8x8x2xf32> to vector<8x8x2xf32>
    %25 = vector.shape_cast %22 : vector<8x8x2xf32> to vector<1x8x8x2xf32>
    tpu.vector_store %arg7[%c0_14, %c0_15, %c0_16, %c0_17], %25 {strides = array<i32>} : memref<1x8x8x2xf32, #tpu.memory_space<vmem>>, vector<1x8x8x2xf32>,
    return
  }
  func.func @transform_0(%arg0: i32, %arg1: i32) -> (i32, i32, i32, i32) {
    %c0_i32 = arith.constant 0 : i32
    %c0_i32_0 = arith.constant 0 : i32
    %c0_i32_1 = arith.constant 0 : i32
    return %arg0, %arg1, %c0_i32, %c0_i32_0 : i32, i32, i32, i32
  }
  func.func @transform_1(%arg0: i32, %arg1: i32) -> (i32, i32, i32) {
    %c0_i32 = arith.constant 0 : i32
    %c0_i32_0 = arith.constant 0 : i32
    %c0_i32_1 = arith.constant 0 : i32
    %c0_i32_2 = arith.constant 0 : i32
    return %c0_i32, %c0_i32_0, %c0_i32_1 : i32, i32, i32
  }
  func.func @transform_2(%arg0: i32, %arg1: i32) -> (i32, i32, i32) {
    %c0_i32 = arith.constant 0 : i32
    %c0_i32_0 = arith.constant 0 : i32
    %c0_i32_1 = arith.constant 0 : i32
    %c0_i32_2 = arith.constant 0 : i32
    return %c0_i32, %c0_i32_0, %c0_i32_1 : i32, i32, i32
  }
  func.func @transform_3(%arg0: i32, %arg1: i32) -> (i32, i32) {
    %c0_i32 = arith.constant 0 : i32
    %c0_i32_0 = arith.constant 0 : i32
    %c0_i32_1 = arith.constant 0 : i32
    return %c0_i32, %c0_i32_0 : i32, i32
  }
  func.func @transform_4(%arg0: i32, %arg1: i32) -> (i32, i32) {
    %c0_i32 = arith.constant 0 : i32
    %c0_i32_0 = arith.constant 0 : i32
    %c0_i32_1 = arith.constant 0 : i32
    return %c0_i32, %c0_i32_0 : i32, i32
  }
  func.func @transform_5(%arg0: i32, %arg1: i32) -> (i32, i32, i32, i32) {
    %c0_i32 = arith.constant 0 : i32
    %c0_i32_0 = arith.constant 0 : i32
    %c0_i32_1 = arith.constant 0 : i32
    return %arg0, %arg1, %c0_i32, %c0_i32_0 : i32, i32, i32, i32
  }
}

</mosaic_0001>

<bundles_post_ra>
// kernel: tpu_custom_call.1
= control target key start
LH: loop header
LB: loop body
LE: loop exit
PB: predicated region body
PF: predicated region fallthrough
CT: control target
= control target key end

     0   :  { %s616_s18 = smov 0   ;;  %s618_s19 = smov 0   ;;  %s735_s0 = inlined_call_operand.vmem [shape: f32[2,16,8,8], index: 0, kind: input, shape index: {}]   ;;  %s736_s1 = inlined_call_operand.vmem [shape: f32[1,1,8], index: 1, kind: input, shape index: {}]   ;;  %s737_s2 = inlined_call_operand.vmem [shape: f32[1,1,8], index: 2, kind: input, shape index: {}]   ;;  %s738_s3 = inlined_call_operand.vmem [shape: f32[8,2], index: 3, kind: input, shape index: {}]   ;;  %s739_s4 = inlined_call_operand.vmem [shape: f32[1,2], index: 4, kind: input, shape index: {}]   ;;  %s740_s5 = inlined_call_operand.vmem [shape: f32[2,8,8,2], index: 5, kind: output, shape index: {}]  }
   0x1   :  { %s620_s20 = smov 0  }
   0x2 LB: > { %s27_s21 = sadd.s32 1, %s580_s19  ;;  %p515_p0 = scmp.ge.s32.totalorder %s584_s20, 1  ;;  %s584_s20 = sphi %s620_s20, %s15_s20   ;;  %s580_s19 = sphi %s618_s19, %s742_s19   ;;  %s576_s18 = sphi %s616_s18, %s741_s18  }
   0x3   : > { %p29_p1 = scmp.ge.s32.totalorder %s27_s21, 2  ;;  %p208_p2 = scmp.lt.s32.totalorder %s584_s20, 3 }
   0x5   : > { %s744_s21 = smov (%p29_p1, %s27_s21), 0  ;;  %p209_p3 = pnand %p515_p0, %p208_p2 }
   0x6   : > { %p245_p4 = scmp.lt.s32.totalorder (!%p209_p3), %s576_s18, 1 }
   0x7   : > { %212 = sbr.rel (%p209_p3) target bundleno = 168 (0xa8), region = 40 }
   0xc   : > { %v344_v0 = vld [vmem:[%s738_s3] sm:$0xff]  ;;  %s746_s18 = smov (!%p245_p4, %s576_s18), 1  ;;  %vm349_vm0 = vcmask 64512   ;;  %vm415_vm1 = vcmask 15360  }
   0xd   : > { %533 = vmatpush.msra.mxu2 %v344_v0  ;;  %534 = vmatpush.msra.mxu3 %v344_v0  ;;  %v642_v1 = vld [vmem:[%s736_s1] ss:$0 sm:$0xff]  ;;  %s530_s26 = sshll.u32 %s746_s18, 7  ;;  %s531_s7 = sshll.u32 %s746_s18, 6 }
   0xe   : > { %389 = vmatpush.msra.mxu0 %v344_v0  ;;  %532 = vmatpush.msra.mxu1 %v344_v0  ;;  %s648_s29 = scalar_lea.vmem %s735_s0, %s530_s26  ;;  %v653_v2 = vld [vmem:[%s737_s2] ss:$0 sm:$0xff]  ;;  %s262_s12 = scalar_lea.vmem %s740_s5, %s531_s7 }
   0xf   : > { %v272_v3 = vld [vmem:[%s648_s29 + $0x40] sm:$0xff]  ;;  %v273_v4 = vld [vmem:[%s648_s29 + $0x48] sm:$0xff]  ;;  %v274_v25 = vld [vmem:[%s648_s29 + $0x50] sm:$0xff] }
  0x10   : > { %v276_v5 = vld [vmem:[%s648_s29 + $0x60] sm:$0xff]  ;;  %v292_v6 = vmul.f32 %v642_v1, %v272_v3  ;;  %v293_v7 = vmul.f32 %v642_v1, %v273_v4  ;;  %v277_v8 = vld [vmem:[%s648_s29 + $0x68] sm:$0xff]  ;;  %v275_v26 = vld [vmem:[%s648_s29 + $0x58] sm:$0xff]  ;;  %v294_v40 = vmul.f32 %v642_v1, %v274_v25 }
  0x11   : > { %v296_v9 = vmul.f32 %v642_v1, %v276_v5  ;;  %v264_v10 = vld [vmem:[%s648_s29] sm:$0xff]  ;;  %v265_v11 = vld [vmem:[%s648_s29 + $0x8] sm:$0xff]  ;;  %v297_v12 = vmul.f32 %v642_v1, %v277_v8  ;;  %v278_v31 = vld [vmem:[%s648_s29 + $0x70] sm:$0xff]  ;;  %v295_v41 = vmul.f32 %v642_v1, %v275_v26 }
  0x12   : > { %v284_v13 = vmul.f32 %v642_v1, %v264_v10  ;;  %v285_v14 = vmul.f32 %v642_v1, %v265_v11  ;;  %v268_v15 = vld [vmem:[%s648_s29 + $0x20] sm:$0xff]  ;;  %v269_v16 = vld [vmem:[%s648_s29 + $0x28] sm:$0xff]  ;;  %v312_v17 = vadd.f32 %v653_v2, %v292_v6  ;;  %v313_v18 = vadd.f32 %v653_v2, %v293_v7  ;;  %v279_v36 = vld [vmem:[%s648_s29 + $0x78] sm:$0xff] }
  0x13   : > { %v316_v19 = vadd.f32 %v653_v2, %v296_v9  ;;  %v288_v20 = vmul.f32 %v642_v1, %v268_v15  ;;  %v317_v21 = vadd.f32 %v653_v2, %v297_v12  ;;  %v289_v24 = vmul.f32 %v642_v1, %v269_v16  ;;  %v266_v37 = vld [vmem:[%s648_s29 + $0x10] sm:$0xff]  ;;  %v267_v42 = vld [vmem:[%s648_s29 + $0x18] sm:$0xff]  ;;  %v561_v12 = vld [vmem:[%s739_s4] ss:$0 sm:$0xff] }
  0x14   : > { %v304_v22 = vadd.f32 %v653_v2, %v284_v13  ;;  %v305_v23 = vadd.f32 %v653_v2, %v285_v14  ;;  %v328_v27 = vmax.f32 %v312_v17, 0.0  ;;  %v329_v28 = vmax.f32 %v313_v18, 0.0  ;;  %v270_v51 = vld [vmem:[%s648_s29 + $0x30] sm:$0xff]  ;;  %v271_v52 = vld [vmem:[%s648_s29 + $0x38] sm:$0xff] }
  0x15   : > { %v332_v29 = vmax.f32 %v316_v19, 0.0  ;;  %v308_v30 = vadd.f32 %v653_v2, %v288_v20  ;;  %v333_v32 = vmax.f32 %v317_v21, 0.0  ;;  %v309_v35 = vadd.f32 %v653_v2, %v289_v24 }
  0x16   : > { %v320_v33 = vmax.f32 %v304_v22, 0.0  ;;  %v321_v34 = vmax.f32 %v305_v23, 0.0  ;;  %v340_v38 = vadd.f32 %v329_v28, %v328_v27  ;;  %v298_v46 = vmul.f32 %v642_v1, %v278_v31 }
  0x17   : > { %v324_v39 = vmax.f32 %v308_v30, 0.0  ;;  %v342_v43 = vadd.f32 %v333_v32, %v332_v29  ;;  %v325_v45 = vmax.f32 %v309_v35, 0.0  ;;  %v314_v47 = vadd.f32 %v653_v2, %v294_v40 }
  0x18   : > { %v336_v44 = vadd.f32 %v321_v34, %v320_v33  ;;  %524 = vmatmul.msk.f32.vlgmr.msra.gmra.mxu2 %vm349_vm0, %v340_v38  ;;  %v315_v48 = vadd.f32 %v653_v2, %v295_v41  ;;  %v299_v49 = vmul.f32 %v642_v1, %v279_v36  ;;  %v286_v50 = vmul.f32 %v642_v1, %v266_v37 }
  0x19   : > { %526 = vmatmul.msk.f32.vlgmr.msra.gmra.mxu3 %vm349_vm0, %v342_v43  ;;  %v338_v53 = vadd.f32 %v325_v45, %v324_v39  ;;  %v318_v54 = vadd.f32 %v653_v2, %v298_v46  ;;  %v287_v55 = vmul.f32 %v642_v1, %v267_v42  ;;  %v330_v56 = vmax.f32 %v314_v47, 0.0 }
  0x1a   : > { %520 = vmatmul.msk.f32.vlgmr.msra.gmra.mxu0 %vm349_vm0, %v336_v44  ;;  %v331_v57 = vmax.f32 %v315_v48, 0.0  ;;  %v319_v58 = vadd.f32 %v653_v2, %v299_v49  ;;  %v306_v59 = vadd.f32 %v653_v2, %v286_v50  ;;  %v290_v62 = vmul.f32 %v642_v1, %v270_v51 }
  0x1b   : > { %522 = vmatmul.msk.f32.vlgmr.msra.gmra.mxu1 %vm349_vm0, %v338_v53  ;;  %v334_v60 = vmax.f32 %v318_v54, 0.0  ;;  %v307_v61 = vadd.f32 %v653_v2, %v287_v55  ;;  %v291_v63 = vmul.f32 %v642_v1, %v271_v52 }
  0x1c   : > { %v341_v0 = vadd.f32 %v331_v57, %v330_v56  ;;  %v335_v3 = vmax.f32 %v319_v58, 0.0  ;;  %v322_v4 = vmax.f32 %v306_v59, 0.0  ;;  %v310_v6 = vadd.f32 %v653_v2, %v290_v62 }
  0x1d   : > { %v323_v5 = vmax.f32 %v307_v61, 0.0  ;;  %v311_v7 = vadd.f32 %v653_v2, %v291_v63 }
  0x1e   : > { %v343_v8 = vadd.f32 %v335_v3, %v334_v60  ;;  %v326_v10 = vmax.f32 %v310_v6, 0.0 }
  0x1f   : > { %v337_v9 = vadd.f32 %v323_v5, %v322_v4  ;;  %v327_v11 = vmax.f32 %v311_v7, 0.0 }
  0x20   : > { %525 = vmatmul.msk.f32.gmra.mxu2 %vm349_vm0, %v341_v0 }
  0x21   : > { %527 = vmatmul.msk.f32.gmra.mxu3 %vm349_vm0, %v343_v8  ;;  %v339_v1 = vadd.f32 %v327_v11, %v326_v10 }
  0x22   : > { %521 = vmatmul.msk.f32.gmra.mxu0 %vm349_vm0, %v337_v9 }
  0x23   : > { %523 = vmatmul.msk.f32.gmra.mxu1 %vm349_vm0, %v339_v1 }
  0x97   : > { %v391_v2 = vpop.f32.mrf.mxu0 }
  0x98   : > { %v392_v13 = vadd.f32 %v561_v12, %v391_v2  ;;  %v397_v14 = vpop.f32.mrf.mxu1 }
  0x99   : > { %v398_v15 = vadd.f32 %v561_v12, %v397_v14 }
  0x9a   : > { %416 = vst.msk [vmem:[%s262_s12] sm:$0xff] %vm415_vm1, %v392_v13 }
  0x9b   : > { %418 = vst.msk [vmem:[%s262_s12 + $0x10] sm:$0xff] %vm415_vm1, %v398_v15  ;;  %v403_v16 = vpop.f32.mrf.mxu2 }
  0x9c   : > { %v404_v17 = vadd.f32 %v561_v12, %v403_v16  ;;  %v409_v18 = vpop.f32.mrf.mxu3 }
  0x9d   : > { %v410_v19 = vadd.f32 %v561_v12, %v409_v18 }
  0x9e   : > { %420 = vst.msk [vmem:[%s262_s12 + $0x20] sm:$0xff] %vm415_vm1, %v404_v17 }
  0x9f   : > { %v394_v20 = vpop.f32.mrf.mxu0  ;;  %422 = vst.msk [vmem:[%s262_s12 + $0x30] sm:$0xff] %vm415_vm1, %v410_v19 }
  0xa0   : > { %v395_v21 = vadd.f32 %v561_v12, %v394_v20  ;;  %v400_v22 = vpop.f32.mrf.mxu1 }
  0xa1   : > { %v401_v23 = vadd.f32 %v561_v12, %v400_v22 }
  0xa2   : > { %417 = vst.msk [vmem:[%s262_s12 + $0x8] sm:$0xff] %vm415_vm1, %v395_v21 }
  0xa3   : > { %419 = vst.msk [vmem:[%s262_s12 + $0x18] sm:$0xff] %vm415_vm1, %v401_v23  ;;  %v406_v24 = vpop.f32.mrf.mxu2 }
  0xa4   : > { %v407_v25 = vadd.f32 %v561_v12, %v406_v24  ;;  %v412_v26 = vpop.f32.mrf.mxu3 }
  0xa5   : > { %v413_v27 = vadd.f32 %v561_v12, %v412_v26 }
  0xa6   : > { %421 = vst.msk [vmem:[%s262_s12 + $0x28] sm:$0xff] %vm415_vm1, %v407_v25 }
  0xa7   : > { %423 = vst.msk [vmem:[%s262_s12 + $0x38] sm:$0xff] %vm415_vm1, %v413_v27 }
  0xa8 PF: > { %s15_s20 = sadd.s32 1, %s584_s20   ;;  %s741_s18 = smov %s580_s19 }
  0xa9   : > { %p12_p5 = scmp.ge.s32.totalorder %s15_s20, 4   ;;  %s742_s19 = smov %s744_s21 }
  0xab   :  { %14 = sbr.rel (!%p12_p5) target bundleno = 2 (0x2), region = 70 }

</bundles_post_ra>
